<compile_context>
chip_gen: v7x
topology: tpu7x:2x2x1
jax: 0.10.0
libtpu: 0.0.40
codegen_flags: <defaults>
</compile_context>

<pallas_src>
import functools

import jax
import jax.numpy as jnp
from jax import lax
from jax.experimental import pallas as pl
from jax.experimental.pallas import tpu as pltpu

# --- module hyper-parameters (deterministic, in-script) ---
GAMMA = 2          # BinaryFocalLoss gamma (kernel hard-codes gamma == 2)
FOCAL_ALPHA = 1.0  # BinaryFocalLoss alpha
BCE_W = 0.7        # FocalBCELoss bce_weight

_LANES = 128


def _focal_bce_kernel(x_ref, t_ref, out_ref, *, block_n, bpc, nb, n_rows):
    c = pl.program_id(0)      # "parallel" core-split axis
    b = pl.program_id(1)      # "arbitrary" reduction axis

    @pl.when(b == 0)
    def _():
        out_ref[...] = jnp.zeros_like(out_ref)

    logical = c * bpc + b               # logical block id (may overshoot nb-1 on last core)
    row0 = logical * block_n

    x = x_ref[...].astype(jnp.float32)
    t = t_ref[...].astype(jnp.float32)
    # Numerically stable BCE-with-logits, shared by the focal and weighted-BCE terms.
    bce = jnp.maximum(x, 0.0) - x * t + jnp.log1p(jnp.exp(-jnp.abs(x)))

    def accumulate(bce_val):
        pt = jnp.exp(-bce_val)
        omp = 1.0 - pt
        focal = FOCAL_ALPHA * (omp * omp) * bce_val      # gamma == 2 (module default)
        shape3 = (block_n // 8, 8, bce_val.shape[-1])
        # (8, L) sublane-slab partials: full-vreg VALU adds only, no XLU reduce and
        # no single-sublane masked read-modify-write stores.
        out_ref[0:8, :] += jnp.sum(focal.reshape(shape3), axis=0)
        out_ref[8:16, :] += jnp.sum(bce_val.reshape(shape3), axis=0)

    in_range = logical < nb                                   # skip duplicated blocks
    is_full = jnp.logical_and(in_range, row0 + block_n <= n_rows)
    is_ragged = jnp.logical_and(in_range, row0 + block_n > n_rows)

    @pl.when(is_full)            # steady state: no masking work at all
    def _():
        accumulate(bce)

    @pl.when(is_ragged)          # boundary block: mask rows past N (select, no 0*Inf)
    def _():
        rid = lax.broadcasted_iota(jnp.int32, bce.shape, 0) + row0
        accumulate(jnp.where(rid < n_rows, bce, 0.0))


def focal_bce_loss(logits, targets, label_weight, *,
                   block_bytes=2 << 20, block_rows=None, core_splits=2):
    """logits, targets: [N, L] (f32 / bf16 / narrow int); label_weight: [L] -> f32 loss."""
    N, L = logits.shape

    # Sublane granularity follows the narrowest streamed dtype's packed-tile rule:
    # 8 rows (32-bit), 16 (bf16), 32 (8-bit).
    min_item = min(jnp.dtype(logits.dtype).itemsize, jnp.dtype(targets.dtype).itemsize)
    g = max(8, 32 // max(1, min_item))

    lane_pad = _LANES * pl.cdiv(L, _LANES)            # per-row VMEM footprint (lanes)
    if block_rows is None:
        block_rows = max(g, (block_bytes // (lane_pad * 4)) // g * g)
    block_n = min(g * pl.cdiv(block_rows, g), g * pl.cdiv(N, g))

    nb = pl.cdiv(N, block_n)                          # number of real blocks
    core_splits = max(1, min(core_splits, nb))
    bpc = pl.cdiv(nb, core_splits)                    # blocks per core

    kernel = functools.partial(_focal_bce_kernel, block_n=block_n, bpc=bpc,
                               nb=nb, n_rows=N)

    # Clamp duplicated trailing blocks of the last core onto the final real block;
    # the kernel skips their contribution (logical >= nb).
    in_map = lambda c, b: (jnp.minimum(c * bpc + b, nb - 1), 0)

    partials = pl.pallas_call(
        kernel,
        out_shape=jax.ShapeDtypeStruct((core_splits * 16, L), jnp.float32),
        grid_spec=pltpu.PrefetchScalarGridSpec(
            num_scalar_prefetch=0,
            grid=(core_splits, bpc),
            in_specs=[pl.BlockSpec((block_n, L), in_map),
                      pl.BlockSpec((block_n, L), in_map)],
            out_specs=pl.BlockSpec((16, L), lambda c, b: (c, 0)),
        ),
        compiler_params=pltpu.CompilerParams(
            dimension_semantics=("parallel", "arbitrary"),
            vmem_limit_bytes=32 * 1024 * 1024),
    )(logits, targets)

    # Tiny epilogue: fold sublane/core partials, apply label weights, normalise once.
    partials = partials.reshape(core_splits, 2, 8, L)
    focal_sum = jnp.sum(partials[:, 0])
    bce_cols = jnp.sum(partials[:, 1], axis=(0, 1))           # per-label sums, (L,)
    w = label_weight.astype(jnp.float32)
    wbce = jnp.dot(bce_cols, w) / (jnp.sum(w) * N)
    focal_mean = focal_sum / (N * L)
    return BCE_W * wbce + (1.0 - BCE_W) * focal_mean


def _reference(logits, targets, label_weight):
    # Pure-JAX mirror of the PyTorch FocalBCELoss forward.
    x = logits.astype(jnp.float32)
    t = targets.astype(jnp.float32)
    w = label_weight.astype(jnp.float32)
    bce = jnp.maximum(x, 0.0) - x * t + jnp.log1p(jnp.exp(-jnp.abs(x)))
    pt = jnp.exp(-bce)
    focal_mean = jnp.mean(FOCAL_ALPHA * (1.0 - pt) ** GAMMA * bce)
    eps = 1e-15
    p = jnp.clip(jax.nn.sigmoid(x), eps, 1.0 - eps)
    ce = -(t * jnp.log(p) + (1.0 - t) * jnp.log(1.0 - p))
    wbce = jnp.mean(jnp.sum(ce * w[None, :], axis=1) / jnp.sum(w))
    return BCE_W * wbce + (1.0 - BCE_W) * focal_mean


if __name__ == "__main__":
    def make_case(key, n, l):
        k1, k2 = jax.random.split(key)
        logits = jax.random.normal(k1, (n, l), dtype=jnp.float32)
        targets = jax.random.bernoulli(k2, p=0.3, shape=(n, l)).astype(jnp.float32)
        weight = (jnp.arange(l, dtype=jnp.float32) % 4 + 1.0)   # deterministic [n_labels]
        return logits, targets, weight

    key = jax.random.PRNGKey(0)

    # Cases: single block (default sizing), multi-block + 2-way core split with a
    # ragged tail, and a skipped duplicated block on the last core.
    for (n, l, kw) in [(8, 30, {}),
                       (50, 30, dict(block_rows=16, core_splits=2)),
                       (33, 30, dict(block_rows=8, core_splits=2))]:
        key, sub = jax.random.split(key)
        logits, targets, weight = make_case(sub, n, l)
        loss = jax.block_until_ready(focal_bce_loss(logits, targets, weight, **kw))
        ref = _reference(logits, targets, weight)
        assert jnp.allclose(loss, ref, rtol=2e-5, atol=1e-6), (n, l, kw, loss, ref)

    # bf16 logits streamed directly (kernel upcasts; no wrapper-side cast round trip).
    key, sub = jax.random.split(key)
    logits, targets, weight = make_case(sub, 40, 30)
    logits_bf16 = logits.astype(jnp.bfloat16)
    loss = jax.block_until_ready(focal_bce_loss(logits_bf16, targets, weight))
    ref = _reference(logits_bf16.astype(jnp.float32), targets, weight)
    assert jnp.allclose(loss, ref, rtol=2e-5, atol=1e-6), (loss, ref)

    print("KERNEL_OK")
</pallas_src>

<mosaic_0001>
module attributes {stable_mosaic.version = 11 : i64} {
  func.func @_focal_bce_kernel(%arg0: i32, %arg1: i32, %arg2: memref<8x30xf32, #tpu.memory_space<vmem>>, %arg3: memref<8x30xf32, #tpu.memory_space<vmem>>, %arg4: memref<16x30xf32, #tpu.memory_space<vmem>>) attributes {dimension_semantics = [#tpu.dimension_semantics<parallel>, #tpu.dimension_semantics<arbitrary>], iteration_bounds = array<i64: 1, 1>, scalar_prefetch = 0 : i64, scratch_operands = 0 : i64, tpu.core_type = #tpu.core_type<tc>, window_params = [{transform_indices = @transform_0, window_bounds = array<i64: 8, 30>}, {transform_indices = @transform_1, window_bounds = array<i64: 8, 30>}, {transform_indices = @transform_2, window_bounds = array<i64: 16, 30>}]} {
    %c0_i32 = arith.constant 0 : i32
    %0 = arith.cmpi eq, %arg1, %c0_i32 : i32
    %1 = arith.extui %0 : i1 to i32
    %c0_i32_0 = arith.constant 0 : i32
    %2 = arith.cmpi ne, %1, %c0_i32_0 : i32
    scf.if %2 {
      %cst_12 = arith.constant 0.000000e+00 : f32
      %29 = vector.broadcast %cst_12 : f32 to vector<16x30xf32>
      %c0_13 = arith.constant 0 : index
      %c0_14 = arith.constant 0 : index
      %30 = vector.load %arg4[%c0_13, %c0_14] : memref<16x30xf32, #tpu.memory_space<vmem>>, vector<16x30xf32>
      tpu.vector_store %arg4[%c0_13, %c0_14], %29 {strides = array<i32>} : memref<16x30xf32, #tpu.memory_space<vmem>>, vector<16x30xf32>,
    } else {
    }
    %c1_i32 = arith.constant 1 : i32
    %3 = arith.muli %arg0, %c1_i32 : i32
    %4 = arith.addi %3, %arg1 : i32
    %c8_i32 = arith.constant 8 : i32
    %5 = arith.muli %4, %c8_i32 : i32
    %c0 = arith.constant 0 : index
    %c0_1 = arith.constant 0 : index
    %6 = vector.load %arg2[%c0, %c0_1] : memref<8x30xf32, #tpu.memory_space<vmem>>, vector<8x30xf32>
    %c0_2 = arith.constant 0 : index
    %c0_3 = arith.constant 0 : index
    %7 = vector.load %arg3[%c0_2, %c0_3] : memref<8x30xf32, #tpu.memory_space<vmem>>, vector<8x30xf32>
    %cst = arith.constant 0.000000e+00 : f32
    %8 = vector.broadcast %cst : f32 to vector<8x30xf32>
    %9 = arith.maximumf %6, %8 : vector<8x30xf32>
    %10 = arith.mulf %6, %7 : vector<8x30xf32>
    %11 = arith.subf %9, %10 : vector<8x30xf32>
    %12 = math.absf %6 : vector<8x30xf32>
    %cst_4 = arith.constant 0.000000e+00 : f32
    %13 = vector.broadcast %cst_4 : f32 to vector<8x30xf32>
    %14 = arith.subf %13, %12 : vector<8x30xf32>
    %15 = math.exp %14 : vector<8x30xf32>
    %16 = math.log1p %15 : vector<8x30xf32>
    %17 = arith.addf %11, %16 : vector<8x30xf32>
    %c1_i32_5 = arith.constant 1 : i32
    %18 = arith.cmpi slt, %4, %c1_i32_5 : i32
    %c8_i32_6 = arith.constant 8 : i32
    %19 = arith.addi %5, %c8_i32_6 : i32
    %c8_i32_7 = arith.constant 8 : i32
    %20 = arith.cmpi sle, %19, %c8_i32_7 : i32
    %21 = arith.andi %18, %20 : i1
    %c8_i32_8 = arith.constant 8 : i32
    %22 = arith.addi %5, %c8_i32_8 : i32
    %c8_i32_9 = arith.constant 8 : i32
    %23 = arith.cmpi sgt, %22, %c8_i32_9 : i32
    %24 = arith.andi %18, %23 : i1
    %25 = arith.extui %21 : i1 to i32
    %c0_i32_10 = arith.constant 0 : i32
    %26 = arith.cmpi ne, %25, %c0_i32_10 : i32
    scf.if %26 {
      %cst_12 = arith.constant 0.000000e+00 : f32
      %29 = vector.broadcast %cst_12 : f32 to vector<8x30xf32>
      %30 = arith.subf %29, %17 : vector<8x30xf32>
      %31 = math.exp %30 : vector<8x30xf32>
      %cst_13 = arith.constant 1.000000e+00 : f32
      %32 = vector.broadcast %cst_13 : f32 to vector<8x30xf32>
      %33 = arith.subf %32, %31 : vector<8x30xf32>
      %34 = arith.mulf %33, %33 : vector<8x30xf32>
      %cst_14 = arith.constant 1.000000e+00 : f32
      %35 = vector.broadcast %cst_14 : f32 to vector<8x30xf32>
      %36 = arith.mulf %35, %34 : vector<8x30xf32>
      %37 = arith.mulf %36, %17 : vector<8x30xf32>
      %c0_15 = arith.constant 0 : index
      %c0_16 = arith.constant 0 : index
      %38 = vector.load %arg4[%c0_15, %c0_16] : memref<16x30xf32, #tpu.memory_space<vmem>>, vector<8x30xf32>
      %39 = vector.shape_cast %37 : vector<8x30xf32> to vector<1x8x30xf32>
      %cst_17 = arith.constant dense<0.000000e+00> : vector<8x30xf32>
      %40 = vector.multi_reduction <add>, %39, %cst_17 [0] : vector<1x8x30xf32> to vector<8x30xf32>
      %41 = arith.addf %38, %40 : vector<8x30xf32>
      %c0_18 = arith.constant 0 : index
      %c0_19 = arith.constant 0 : index
      %42 = vector.load %arg4[%c0_18, %c0_19] : memref<16x30xf32, #tpu.memory_space<vmem>>, vector<8x30xf32>
      tpu.vector_store %arg4[%c0_18, %c0_19], %41 {strides = array<i32>} : memref<16x30xf32, #tpu.memory_space<vmem>>, vector<8x30xf32>,
      %c8 = arith.constant 8 : index
      %c0_20 = arith.constant 0 : index
      %43 = vector.load %arg4[%c8, %c0_20] : memref<16x30xf32, #tpu.memory_space<vmem>>, vector<8x30xf32>
      %44 = vector.shape_cast %17 : vector<8x30xf32> to vector<1x8x30xf32>
      %cst_21 = arith.constant dense<0.000000e+00> : vector<8x30xf32>
      %45 = vector.multi_reduction <add>, %44, %cst_21 [0] : vector<1x8x30xf32> to vector<8x30xf32>
      %46 = arith.addf %43, %45 : vector<8x30xf32>
      %c8_22 = arith.constant 8 : index
      %c0_23 = arith.constant 0 : index
      %47 = vector.load %arg4[%c8_22, %c0_23] : memref<16x30xf32, #tpu.memory_space<vmem>>, vector<8x30xf32>
      tpu.vector_store %arg4[%c8_22, %c0_23], %46 {strides = array<i32>} : memref<16x30xf32, #tpu.memory_space<vmem>>, vector<8x30xf32>,
    } else {
    }
    %27 = arith.extui %24 : i1 to i32
    %c0_i32_11 = arith.constant 0 : i32
    %28 = arith.cmpi ne, %27, %c0_i32_11 : i32
    scf.if %28 {
      %29 = tpu.iota {dimensions = array<i32: 0>} : vector<8x30xi32>
      %30 = vector.broadcast %5 : i32 to vector<8x30xi32>
      %31 = arith.addi %29, %30 : vector<8x30xi32>
      %c8_i32_12 = arith.constant 8 : i32
      %32 = vector.broadcast %c8_i32_12 : i32 to vector<8x30xi32>
      %33 = arith.cmpi slt, %31, %32 : vector<8x30xi32>
      %cst_13 = arith.constant 0.000000e+00 : f32
      %34 = vector.broadcast %cst_13 : f32 to vector<8x30xf32>
      %35 = arith.select %33, %17, %34 : vector<8x30xi1>, vector<8x30xf32>
      %cst_14 = arith.constant 0.000000e+00 : f32
      %36 = vector.broadcast %cst_14 : f32 to vector<8x30xf32>
      %37 = arith.subf %36, %35 : vector<8x30xf32>
      %38 = math.exp %37 : vector<8x30xf32>
      %cst_15 = arith.constant 1.000000e+00 : f32
      %39 = vector.broadcast %cst_15 : f32 to vector<8x30xf32>
      %40 = arith.subf %39, %38 : vector<8x30xf32>
      %41 = arith.mulf %40, %40 : vector<8x30xf32>
      %cst_16 = arith.constant 1.000000e+00 : f32
      %42 = vector.broadcast %cst_16 : f32 to vector<8x30xf32>
      %43 = arith.mulf %42, %41 : vector<8x30xf32>
      %44 = arith.mulf %43, %35 : vector<8x30xf32>
      %c0_17 = arith.constant 0 : index
      %c0_18 = arith.constant 0 : index
      %45 = vector.load %arg4[%c0_17, %c0_18] : memref<16x30xf32, #tpu.memory_space<vmem>>, vector<8x30xf32>
      %46 = vector.shape_cast %44 : vector<8x30xf32> to vector<1x8x30xf32>
      %cst_19 = arith.constant dense<0.000000e+00> : vector<8x30xf32>
      %47 = vector.multi_reduction <add>, %46, %cst_19 [0] : vector<1x8x30xf32> to vector<8x30xf32>
      %48 = arith.addf %45, %47 : vector<8x30xf32>
      %c0_20 = arith.constant 0 : index
      %c0_21 = arith.constant 0 : index
      %49 = vector.load %arg4[%c0_20, %c0_21] : memref<16x30xf32, #tpu.memory_space<vmem>>, vector<8x30xf32>
      tpu.vector_store %arg4[%c0_20, %c0_21], %48 {strides = array<i32>} : memref<16x30xf32, #tpu.memory_space<vmem>>, vector<8x30xf32>,
      %c8 = arith.constant 8 : index
      %c0_22 = arith.constant 0 : index
      %50 = vector.load %arg4[%c8, %c0_22] : memref<16x30xf32, #tpu.memory_space<vmem>>, vector<8x30xf32>
      %51 = vector.shape_cast %35 : vector<8x30xf32> to vector<1x8x30xf32>
      %cst_23 = arith.constant dense<0.000000e+00> : vector<8x30xf32>
      %52 = vector.multi_reduction <add>, %51, %cst_23 [0] : vector<1x8x30xf32> to vector<8x30xf32>
      %53 = arith.addf %50, %52 : vector<8x30xf32>
      %c8_24 = arith.constant 8 : index
      %c0_25 = arith.constant 0 : index
      %54 = vector.load %arg4[%c8_24, %c0_25] : memref<16x30xf32, #tpu.memory_space<vmem>>, vector<8x30xf32>
      tpu.vector_store %arg4[%c8_24, %c0_25], %53 {strides = array<i32>} : memref<16x30xf32, #tpu.memory_space<vmem>>, vector<8x30xf32>,
    } else {
    }
    return
  }
  func.func @transform_0(%arg0: i32, %arg1: i32) -> (i32, i32) {
    %c1_i32 = arith.constant 1 : i32
    %0 = arith.muli %arg0, %c1_i32 : i32
    %1 = arith.addi %0, %arg1 : i32
    %c0_i32 = arith.constant 0 : i32
    %2 = arith.minsi %1, %c0_i32 : i32
    %c0_i32_0 = arith.constant 0 : i32
    %c0_i32_1 = arith.constant 0 : i32
    return %2, %c0_i32_0 : i32, i32
  }
  func.func @transform_1(%arg0: i32, %arg1: i32) -> (i32, i32) {
    %c1_i32 = arith.constant 1 : i32
    %0 = arith.muli %arg0, %c1_i32 : i32
    %1 = arith.addi %0, %arg1 : i32
    %c0_i32 = arith.constant 0 : i32
    %2 = arith.minsi %1, %c0_i32 : i32
    %c0_i32_0 = arith.constant 0 : i32
    %c0_i32_1 = arith.constant 0 : i32
    return %2, %c0_i32_0 : i32, i32
  }
  func.func @transform_2(%arg0: i32, %arg1: i32) -> (i32, i32) {
    %c0_i32 = arith.constant 0 : i32
    %c0_i32_0 = arith.constant 0 : i32
    return %arg0, %c0_i32 : i32, i32
  }
}

</mosaic_0001>

<bundles_post_ra>
// kernel: tpu_custom_call.1
= control target key start
LH: loop header
LB: loop body
LE: loop exit
PB: predicated region body
PF: predicated region fallthrough
CT: control target
= control target key end

     0   :  { %7 = vsyncpa [#allocation3], 0  ;;  %s295_s0 = inlined_call_operand.hbm [shape: f32[8,30], index: 0, kind: input, shape index: {}]   ;;  %s296_s1 = inlined_call_operand.hbm [shape: f32[8,30], index: 1, kind: input, shape index: {}]   ;;  %s297_s2 = inlined_call_operand.hbm [shape: f32[16,30], index: 2, kind: output, shape index: {}]  }
   0x1   :  { %8 = vsyncpa [#allocation6], 0 }
   0x2   :  { %9 = vsyncpa [#allocation4], 0  ;;  %s234_s9 = smov [#allocation2]   ;;  %s235_s11 = smov [#allocation5]  }
   0x3   :  { %s21_s10 = sshll.u32 %s234_s9, 4  ;;  %s36_s12 = sshll.u32 %s235_s11, 4  ;;  %s22_s10 = int_to_ptr.vmem [resolvable:$true] %s21_s10  ;;  %s37_s12 = int_to_ptr.vmem [resolvable:$true] %s36_s12 }
   0x4   :  { %s162_s15 = scalar_lea.hbm %s295_s0, 128 }
   0x5   :  { %p163_p0 = scmp.ne.s32.totalorder %s295_s0, %s162_s15  ;;  %p166_p1 = scmp.lt.u32.totalorder %s162_s15, %s295_s0 }
   0x7   :  { %p168_p2 = pnand %p166_p1, %p163_p0 }
   0x9   :  { %171 = shalt.err (!%p168_p2)
}
   0xa   :  { %s172_s20 = scalar_lea.vmem %s22_s10, 128  ;;  %p177_p4 = scmp.lt.s32.totalorder %s22_s10, %s22_s10 }
   0xb   :  { %p173_p3 = scmp.ne.s32.totalorder %s22_s10, %s172_s20  ;;  %p178_p5 = scmp.lt.s32.totalorder %s172_s20, %s172_s20 }
   0xd   :  { %p179_p6 = por %p178_p5, %p177_p4 }
   0xf   :  { %p180_p7 = pnand %p179_p6, %p173_p3 }
  0x11   :  { %183 = shalt.err (!%p180_p7)
}
  0x12   :  { %24 = dma.hbm_to_vmem [thread:$0]  %s295_s0, 128, %s22_s10, [#allocation3]  }
  0x13   :  { %s184_s25 = scalar_lea.hbm %s296_s1, 128 }
  0x14   :  { %p185_p8 = scmp.ne.s32.totalorder %s296_s1, %s184_s25  ;;  %p188_p9 = scmp.lt.u32.totalorder %s184_s25, %s296_s1 }
  0x16   :  { %p190_p10 = pnand %p188_p9, %p185_p8 }
  0x18   :  { %193 = shalt.err (!%p190_p10)
}
  0x19   :  { %s194_s30 = scalar_lea.vmem %s37_s12, 128  ;;  %p199_p12 = scmp.lt.s32.totalorder %s37_s12, %s37_s12 }
  0x1a   :  { %p195_p11 = scmp.ne.s32.totalorder %s37_s12, %s194_s30  ;;  %p200_p13 = scmp.lt.s32.totalorder %s194_s30, %s194_s30 }
  0x1c   :  { %p201_p0 = por %p200_p13, %p199_p12 }
  0x1e   :  { %p202_p1 = pnand %p201_p0, %p195_p11 }
  0x20   :  { %205 = shalt.err (!%p202_p1)
}
  0x21   :  { %39 = dma.hbm_to_vmem [thread:$0]  %s296_s1, 128, %s37_s12, [#allocation6]  }
  0x22   :  { %228 = dma.done.wait [#allocation3], 128  }
  0x23   :  { %229 = vsyncadd [#allocation3], 4294967168 }
  0x24   :  { %230 = dma.done.wait [#allocation6], 128  }
  0x25   :  { %231 = vsyncadd [#allocation6], 4294967168  ;;  %vm56_vm0 = vcmask 244736   ;;  %v236_v0 = vmov 0.0   ;;  %v61_v1 = vld [vmem:[#allocation2] sm:$0xff]  ;;  %v62_v8 = vld [vmem:[#allocation5] sm:$0xff] }
  0x26   :  { %57 = vst.msk [vmem:[#allocation7] sm:$0xff] %vm56_vm0, %v236_v0  ;;  %58 = vst.msk [vmem:[#allocation7 + $0x8] sm:$0xff] %vm56_vm0, %v236_v0  ;;  %v66_v2 = vand.u32 2147483647, %v61_v1  ;;  %v63_v10 = vmax.f32 %v61_v1, 0.0  ;;  %v64_v11 = vmul.f32 %v62_v8, %v61_v1  ;;  %s237_s1 = smov [#allocation7]  }
  0x27   :  { %s133_s4 = sshll.u32 %s237_s1, 4  ;;  %s134_s4 = int_to_ptr.vmem [resolvable:$true] %s133_s4 }
  0x28   :  { %v67_v3 = vsub.f32 0.0, %v66_v2  ;;  %v65_v15 = vsub.f32 %v63_v10, %v64_v11  ;;  %s206_s5 = scalar_lea.vmem %s134_s4, 256  ;;  %p211_p3 = scmp.lt.s32.totalorder %s134_s4, %s134_s4 }
  0x29   :  { %p207_p2 = scmp.ne.s32.totalorder %s134_s4, %s206_s5  ;;  %p212_p4 = scmp.lt.s32.totalorder %s206_s5, %s206_s5 }
  0x2a   :  { %v68_v4 = vmul.f32 1.442695, %v67_v3 }
  0x2b   :  { %p213_p5 = por %p212_p4, %p211_p3 }
  0x2c   :  { %156 = vpow2.f32 %v68_v4 }
  0x2d   :  { %v101_v18 = vld [vmem:[#allocation7 + $0x8] sm:$0xff]  ;;  %v96_v26 = vld [vmem:[#allocation7] sm:$0xff]  ;;  %p214_p6 = pnand %p213_p5, %p207_p2 }
  0x36   :  { %v157_v5 = vpop.eup %156 }
  0x37   :  { %v70_v6 = vadd.f32 1.0, %v157_v5  ;;  %v73_v7 = vmul.f32 -0.5, %v157_v5  ;;  %v76_v12 = vand.u32 2147483647, %v157_v5 }
  0x39   :  { %158 = vlog2.f32 %v70_v6  ;;  %v74_v9 = vadd.f32 1.0, %v73_v7  ;;  %vm77_vm1 = vcmp.lt.f32.partialorder %v76_v12, 0.0004427343 }
  0x3b   :  { %v75_v13 = vmul.f32 %v157_v5, %v74_v9 }
  0x43   :  { %v159_v14 = vpop.eup %158 }
  0x44   :  { %v72_v16 = vmul.f32 0.6931472, %v159_v14 }
  0x46   :  { %v78_v17 = vsel %vm77_vm1, %v75_v13, %v72_v16 }
  0x47   :  { %v79_v19 = vadd.f32 %v78_v17, %v65_v15 }
  0x49   :  { %v90_v20 = vsub.f32 0.0, %v79_v19  ;;  %v103_v21 = vadd.f32 %v101_v18, %v79_v19 }
  0x4b   :  { %v91_v22 = vmul.f32 1.442695, %v90_v20  ;;  %104 = vst.msk [vmem:[#allocation7 + $0x8] sm:$0xff] %vm56_vm0, %v103_v21 }
  0x4d   :  { %160 = vpow2.f32 %v91_v22 }
  0x57   :  { %v161_v23 = vpop.eup %160 }
  0x58   :  { %v93_v24 = vsub.f32 1.0, %v161_v23 }
  0x5a   :  { %v94_v25 = vmul.f32 %v93_v24, %v93_v24 }
  0x5c   :  { %v95_v27 = vmul.f32 %v94_v25, %v79_v19 }
  0x5e   :  { %v98_v28 = vadd.f32 %v96_v26, %v95_v27 }
  0x60   :  { %100 = vst.msk [vmem:[#allocation7] sm:$0xff] %vm56_vm0, %v98_v28 }
  0x61   :  { %217 = shalt.err (!%p214_p6)
}
  0x62   :  { %s218_s8 = scalar_lea.hbm %s297_s2, 256 }
  0x63   :  { %p219_p7 = scmp.ne.s32.totalorder %s297_s2, %s218_s8  ;;  %p222_p8 = scmp.lt.u32.totalorder %s218_s8, %s297_s2 }
  0x65   :  { %p224_p9 = pnand %p222_p8, %p219_p7 }
  0x67   :  { %227 = shalt.err (!%p224_p9)
}
  0x68   :  { %s238_s13 = smov 128   ;;  %s239_s14 = smov 8  }
  0x69   :  { %139 = dma.vmem_to_hbm [thread:$0]  %s134_s4, 256, %s297_s2, [#allocation4], %s238_s13, %s238_s13, %s239_s14  }
  0x6a   :  { %232 = dma.done.wait [#allocation4], 256  }
  0x6b   :  { %233 = vsyncadd [#allocation4], 4294967040 }
  0x6c   :  { %143 = vsyncpa [#allocation3], 1 }
  0x6d   :  { %144 = vsyncpa [#allocation6], 1 }
  0x6e   :  { %145 = vsyncpa [#allocation4], 1 }

</bundles_post_ra>
